<compile_context>
chip_gen: v6e
topology: v6e:2x2x1
jax: 0.10.0
libtpu: 0.0.40
codegen_flags: <defaults>
</compile_context>

<pallas_src>
import functools
import math

import jax
import jax.numpy as jnp
from jax import lax
from jax.experimental import pallas as pl
from jax.experimental.pallas import tpu as pltpu


# ----------------------------- Fused encoder kernel -------------------------


def _encoder_kernel(emb_ref, mask_ref, eg_ref, eb_ref,
                    wqkv_ref, bqkv_ref, wao_ref, bao_ref, g1_ref, b1_ref,
                    wff1_ref, bff1_ref, wff2_ref, bff2_ref, g2_ref, b2_ref,
                    out_ref, hid_ref, ctx_ref,
                    *, num_layers, num_heads, head_dim, hidden, eps):
    H = hidden
    scale = 1.0 / math.sqrt(head_dim)
    layer = pl.program_id(1)

    def layernorm(x, g, b):
        mu = jnp.mean(x, axis=-1, keepdims=True)
        var = jnp.mean((x - mu) * (x - mu), axis=-1, keepdims=True)
        return (x - mu) * lax.rsqrt(var + eps) * g + b

    def dense(x, w, b):
        # bf16 at the MXU boundary, f32 accumulation, f32 bias add.
        return jnp.dot(x.astype(jnp.bfloat16), w,
                       preferred_element_type=jnp.float32) + b

    # First layer for this batch block: embedding LayerNorm into the resident
    # hidden-state scratch.
    @pl.when(layer == 0)
    def _():
        hid_ref[...] = layernorm(emb_ref[...], eg_ref[...], eb_ref[...])

    h_in = hid_ref[...]                                        # (S, H) f32

    # --- Self-attention: fused QKV projection (one (H,3H) matmul) ----------
    qkv = dense(h_in, wqkv_ref[...], bqkv_ref[...])            # (S, 3H) f32
    qkv_bf = qkv.astype(jnp.bfloat16)                          # single cast for all heads

    # Additive mask bias, hoisted out of the head loop (f32).
    bias = (1.0 - mask_ref[...]) * (-1e9)                      # (1, S)

    # Per-head attention on static column slices of the VMEM-resident QKV slab;
    # head contexts are written directly into ctx scratch (no concatenates).
    # TODO(synk): at real BERT shapes (S=512, Dh=64) retile flash-style so the
    # MXU sees >=128x128 operands; the tiny (S,Dh) dots are fine only at toy size.
    for h in range(num_heads):
        c0, c1 = h * head_dim, (h + 1) * head_dim
        q = qkv_bf[:, c0:c1]                                   # (S, Dh) bf16
        k = qkv_bf[:, H + c0:H + c1]                           # (S, Dh) bf16
        v = qkv_bf[:, 2 * H + c0:2 * H + c1]                   # (S, Dh) bf16
        # bf16 x bf16 -> f32 accumulation, transposed-B contraction (no k.T).
        s = lax.dot_general(q, k, (((1,), (1,)), ((), ())),
                            preferred_element_type=jnp.float32)  # (S, S) f32
        s = s * scale + bias                                   # f32 scale + mask
        s = s - jnp.max(s, axis=-1, keepdims=True)
        p = jnp.exp(s)
        p = p * pl.reciprocal(jnp.sum(p, axis=-1, keepdims=True), approx=True)
        ctx_ref[:, c0:c1] = jnp.dot(p.astype(jnp.bfloat16), v,
                                    preferred_element_type=jnp.float32)

    attn_out = dense(ctx_ref[...], wao_ref[...], bao_ref[...])
    h_mid = layernorm(attn_out + h_in, g1_ref[...], b1_ref[...])

    # --- Feed-forward -------------------------------------------------------
    inter = dense(h_mid, wff1_ref[...], bff1_ref[...])
    # TODO(synk): HF BERT uses exact erf-GELU; tanh approximation used here.
    gc = math.sqrt(2.0 / math.pi)
    inter = 0.5 * inter * (1.0 + jnp.tanh(
        gc * (inter + 0.044715 * inter * inter * inter)))
    ffn_out = dense(inter, wff2_ref[...], bff2_ref[...])
    h_out = layernorm(ffn_out + h_mid, g2_ref[...], b2_ref[...])

    hid_ref[...] = h_out                                       # carry to next layer

    @pl.when(layer == num_layers - 1)
    def _():
        out_ref[...] = h_out


def pallas_bert_encoder(emb, mask, p, cfg):
    """emb: (B, S, H) f32 pre-LN embedding sum; mask: (B, 1, S) f32."""
    B, S, H = emb.shape
    L = cfg.num_layers
    nH = cfg.num_heads
    Dh = H // nH
    I = cfg.intermediate_size

    kernel = functools.partial(
        _encoder_kernel, num_layers=L, num_heads=nH, head_dim=Dh,
        hidden=H, eps=cfg.layer_norm_eps)

    per_layer = lambda b, l: (l, 0, 0)   # weight streaming (double-buffered)
    per_batch = lambda b, l: (b, 0, 0)   # activations / output
    fixed = lambda b, l: (0, 0)

    grid_spec = pltpu.PrefetchScalarGridSpec(
        num_scalar_prefetch=0,
        grid=(B, L),
        in_specs=[
            pl.BlockSpec((None, S, H), per_batch),        # emb
            pl.BlockSpec((None, 1, S), per_batch),        # mask
            pl.BlockSpec((1, H), fixed),                  # emb LN gamma
            pl.BlockSpec((1, H), fixed),                  # emb LN beta
            pl.BlockSpec((None, H, 3 * H), per_layer),    # wqkv (bf16)
            pl.BlockSpec((None, 1, 3 * H), per_layer),    # bqkv
            pl.BlockSpec((None, H, H), per_layer),        # attn out w (bf16)
            pl.BlockSpec((None, 1, H), per_layer),        # attn out b
            pl.BlockSpec((None, 1, H), per_layer),        # attn LN gamma
            pl.BlockSpec((None, 1, H), per_layer),        # attn LN beta
            pl.BlockSpec((None, H, I), per_layer),        # ffn in w (bf16)
            pl.BlockSpec((None, 1, I), per_layer),        # ffn in b
            pl.BlockSpec((None, I, H), per_layer),        # ffn out w (bf16)
            pl.BlockSpec((None, 1, H), per_layer),        # ffn out b
            pl.BlockSpec((None, 1, H), per_layer),        # ffn LN gamma
            pl.BlockSpec((None, 1, H), per_layer),        # ffn LN beta
        ],
        out_specs=pl.BlockSpec((None, S, H), per_batch),  # resident across layer axis
        scratch_shapes=[
            pltpu.VMEM((S, H), jnp.float32),              # hidden-state carry
            pltpu.VMEM((S, H), jnp.float32),              # per-layer attention context
        ],
    )

    return pl.pallas_call(
        kernel,
        grid_spec=grid_spec,
        out_shape=jax.ShapeDtypeStruct((B, S, H), jnp.float32),
        compiler_params=pltpu.CompilerParams(
            dimension_semantics=("parallel", "arbitrary"),
            vmem_limit_bytes=48 * 1024 * 1024),
    )(emb, mask, p["emb_ln_g"], p["emb_ln_b"],
      p["wqkv"], p["bqkv"], p["wao"], p["bao"], p["g1"], p["b1"],
      p["wff1"], p["bff1"], p["wff2"], p["bff2"], p["g2"], p["b2"])


# ------------------------------ Model (glue) --------------------------------


class Config:
    vocab_size = 100
    max_position_embeddings = 32
    type_vocab_size = 2
    hidden_size = 32
    num_heads = 4
    intermediate_size = 64
    num_layers = 2
    num_labels = 3
    layer_norm_eps = 1e-12


def init_params(key, cfg):
    std = 0.02
    keys = iter(jax.random.split(key, 128))

    def dense(k, din, dout):
        return {
            "w": jax.random.normal(k, (din, dout), jnp.float32) * std,
            "b": jnp.zeros((dout,), jnp.float32),
        }

    def layernorm(h):
        return {"g": jnp.ones((h,), jnp.float32), "b": jnp.zeros((h,), jnp.float32)}

    H, I = cfg.hidden_size, cfg.intermediate_size
    params = {
        "word_emb": jax.random.normal(next(keys), (cfg.vocab_size, H), jnp.float32) * std,
        "pos_emb": jax.random.normal(next(keys), (cfg.max_position_embeddings, H), jnp.float32) * std,
        "type_emb": jax.random.normal(next(keys), (cfg.type_vocab_size, H), jnp.float32) * std,
        "emb_ln": layernorm(H),
        "layers": [],
        "pooler": dense(next(keys), H, H),
        "classifier": dense(next(keys), H, cfg.num_labels),
    }
    for _ in range(cfg.num_layers):
        params["layers"].append({
            "q": dense(next(keys), H, H),
            "k": dense(next(keys), H, H),
            "v": dense(next(keys), H, H),
            "attn_out": dense(next(keys), H, H),
            "attn_ln": layernorm(H),
            "ffn_in": dense(next(keys), H, I),
            "ffn_out": dense(next(keys), I, H),
            "ffn_ln": layernorm(H),
        })
    return params


def pack_params(params, cfg):
    """One-time (init-time) packing: QKV fusion, layer stacking, bf16 weight cast.

    Hoisted out of the jitted forward so per-inference calls do zero repacking.
    """
    layers = params["layers"]

    def stack_w(name):       # matmul weights -> bf16 (halves weight DMA bytes)
        return jnp.stack([lp[name]["w"] for lp in layers]).astype(jnp.bfloat16)

    def stack_b(name):       # biases stay f32, shaped (L, 1, N)
        return jnp.stack([lp[name]["b"][None, :] for lp in layers])

    def stack_ln(name, field):
        return jnp.stack([lp[name][field][None, :] for lp in layers])

    wqkv = jnp.stack([
        jnp.concatenate([lp["q"]["w"], lp["k"]["w"], lp["v"]["w"]], axis=1)
        for lp in layers]).astype(jnp.bfloat16)                  # (L, H, 3H)
    bqkv = jnp.stack([
        jnp.concatenate([lp["q"]["b"], lp["k"]["b"], lp["v"]["b"]])[None, :]
        for lp in layers])                                       # (L, 1, 3H)

    return {
        "word_emb": params["word_emb"],
        "pos_emb": params["pos_emb"],
        "type_emb": params["type_emb"],
        "emb_ln_g": params["emb_ln"]["g"][None, :],
        "emb_ln_b": params["emb_ln"]["b"][None, :],
        "wqkv": wqkv, "bqkv": bqkv,
        "wao": stack_w("attn_out"), "bao": stack_b("attn_out"),
        "g1": stack_ln("attn_ln", "g"), "b1": stack_ln("attn_ln", "b"),
        "wff1": stack_w("ffn_in"), "bff1": stack_b("ffn_in"),
        "wff2": stack_w("ffn_out"), "bff2": stack_b("ffn_out"),
        "g2": stack_ln("ffn_ln", "g"), "b2": stack_ln("ffn_ln", "b"),
        "pooler_w": params["pooler"]["w"], "pooler_b": params["pooler"]["b"],
        "cls_w": params["classifier"]["w"], "cls_b": params["classifier"]["b"],
    }


def bert_classifier_forward(packed, input_ids, attention_mask, cfg):
    B, S = input_ids.shape

    # Embedding lookups (gather) stay in XLA glue; sum is the pre-LN input.
    word = jnp.take(packed["word_emb"], input_ids, axis=0)       # (B, S, H)
    pos = packed["pos_emb"][:S][None, :, :]                      # (1, S, H)
    tok = packed["type_emb"][0][None, None, :]                   # token_type_ids = 0
    emb = (word + pos + tok).astype(jnp.float32)                 # (B, S, H)

    mask = attention_mask.astype(jnp.float32).reshape(B, 1, S)   # (B, 1, S)

    # Whole encoder = one Pallas launch (grid over batch x layers).
    hidden = pallas_bert_encoder(emb, mask, packed, cfg)         # (B, S, H)

    # Pooler (CLS token) + classifier: smaller than one vreg and the N=3
    # logits output is lane-sparse -> keep in plain XLA.
    cls = hidden[:, 0, :]                                        # (B, H)
    pooled = jnp.tanh(cls @ packed["pooler_w"] + packed["pooler_b"])
    logits = pooled @ packed["cls_w"] + packed["cls_b"]
    return logits                                                # (B, num_labels)


# --------------------------------- Main --------------------------------------


if __name__ == "__main__":
    cfg = Config()
    key = jax.random.PRNGKey(0)
    k_param, k_ids = jax.random.split(key)

    params = init_params(k_param, cfg)
    packed = pack_params(params, cfg)   # one-time packing, outside jit

    B, S = 2, 8
    input_ids = jax.random.randint(k_ids, (B, S), 0, cfg.vocab_size, dtype=jnp.int32)
    attention_mask = jnp.ones((B, S), dtype=jnp.int32)
    attention_mask = attention_mask.at[1, 6:].set(0)   # pad tail of second example

    fwd = jax.jit(functools.partial(bert_classifier_forward, cfg=cfg))
    logits = fwd(packed, input_ids, attention_mask)
    logits = jax.block_until_ready(logits)

    assert logits.shape == (B, cfg.num_labels)
    assert bool(jnp.all(jnp.isfinite(logits)))
    print("KERNEL_OK")
</pallas_src>

<mosaic_0001>
module attributes {stable_mosaic.version = 11 : i64} {
  func.func @_encoder_kernel(%arg0: i32, %arg1: i32, %arg2: memref<1x8x32xf32, #tpu.memory_space<vmem>>, %arg3: memref<1x1x8xf32, #tpu.memory_space<vmem>>, %arg4: memref<1x32xf32, #tpu.memory_space<vmem>>, %arg5: memref<1x32xf32, #tpu.memory_space<vmem>>, %arg6: memref<1x32x96xbf16, #tpu.memory_space<vmem>>, %arg7: memref<1x1x96xf32, #tpu.memory_space<vmem>>, %arg8: memref<1x32x32xbf16, #tpu.memory_space<vmem>>, %arg9: memref<1x1x32xf32, #tpu.memory_space<vmem>>, %arg10: memref<1x1x32xf32, #tpu.memory_space<vmem>>, %arg11: memref<1x1x32xf32, #tpu.memory_space<vmem>>, %arg12: memref<1x32x64xbf16, #tpu.memory_space<vmem>>, %arg13: memref<1x1x64xf32, #tpu.memory_space<vmem>>, %arg14: memref<1x64x32xbf16, #tpu.memory_space<vmem>>, %arg15: memref<1x1x32xf32, #tpu.memory_space<vmem>>, %arg16: memref<1x1x32xf32, #tpu.memory_space<vmem>>, %arg17: memref<1x1x32xf32, #tpu.memory_space<vmem>>, %arg18: memref<1x8x32xf32, #tpu.memory_space<vmem>>, %arg19: memref<8x32xf32, #tpu.memory_space<vmem>>, %arg20: memref<8x32xf32, #tpu.memory_space<vmem>>) attributes {dimension_semantics = [#tpu.dimension_semantics<parallel>, #tpu.dimension_semantics<arbitrary>], iteration_bounds = array<i64: 2, 2>, scalar_prefetch = 0 : i64, scratch_operands = 2 : i64, tpu.core_type = #tpu.core_type<tc>, window_params = [{transform_indices = @transform_0, window_bounds = array<i64: 1, 8, 32>}, {transform_indices = @transform_1, window_bounds = array<i64: 1, 1, 8>}, {pipeline_mode = #tpu.pipeline_mode<synchronous>, transform_indices = @transform_2, window_bounds = array<i64: 1, 32>}, {pipeline_mode = #tpu.pipeline_mode<synchronous>, transform_indices = @transform_3, window_bounds = array<i64: 1, 32>}, {transform_indices = @transform_4, window_bounds = array<i64: 1, 32, 96>}, {transform_indices = @transform_5, window_bounds = array<i64: 1, 1, 96>}, {transform_indices = @transform_6, window_bounds = array<i64: 1, 32, 32>}, {transform_indices = @transform_7, window_bounds = array<i64: 1, 1, 32>}, {transform_indices = @transform_8, window_bounds = array<i64: 1, 1, 32>}, {transform_indices = @transform_9, window_bounds = array<i64: 1, 1, 32>}, {transform_indices = @transform_10, window_bounds = array<i64: 1, 32, 64>}, {transform_indices = @transform_11, window_bounds = array<i64: 1, 1, 64>}, {transform_indices = @transform_12, window_bounds = array<i64: 1, 64, 32>}, {transform_indices = @transform_13, window_bounds = array<i64: 1, 1, 32>}, {transform_indices = @transform_14, window_bounds = array<i64: 1, 1, 32>}, {transform_indices = @transform_15, window_bounds = array<i64: 1, 1, 32>}, {transform_indices = @transform_16, window_bounds = array<i64: 1, 8, 32>}]} {
    %c0_i32 = arith.constant 0 : i32
    %0 = arith.cmpi eq, %arg1, %c0_i32 : i32
    %1 = arith.extui %0 : i1 to i32
    %c0_i32_0 = arith.constant 0 : i32
    %2 = arith.cmpi ne, %1, %c0_i32_0 : i32
    scf.if %2 {
      %c0_90 = arith.constant 0 : index
      %c0_91 = arith.constant 0 : index
      %c0_92 = arith.constant 0 : index
      %203 = vector.load %arg2[%c0_90, %c0_91, %c0_92] : memref<1x8x32xf32, #tpu.memory_space<vmem>>, vector<1x8x32xf32>
      %204 = vector.shape_cast %203 : vector<1x8x32xf32> to vector<8x32xf32>
      %c0_93 = arith.constant 0 : index
      %c0_94 = arith.constant 0 : index
      %205 = vector.load %arg4[%c0_93, %c0_94] : memref<1x32xf32, #tpu.memory_space<vmem>>, vector<1x32xf32>
      %c0_95 = arith.constant 0 : index
      %c0_96 = arith.constant 0 : index
      %206 = vector.load %arg5[%c0_95, %c0_96] : memref<1x32xf32, #tpu.memory_space<vmem>>, vector<1x32xf32>
      %cst_97 = arith.constant dense<0.000000e+00> : vector<8xf32>
      %207 = vector.multi_reduction <add>, %204, %cst_97 [1] : vector<8x32xf32> to vector<8xf32>
      %208 = vector.shape_cast %207 : vector<8xf32> to vector<8x1xf32>
      %cst_98 = arith.constant 3.200000e+01 : f32
      %209 = vector.broadcast %cst_98 : f32 to vector<8x1xf32>
      %210 = arith.divf %208, %209 : vector<8x1xf32>
      %211 = vector.broadcast %210 : vector<8x1xf32> to vector<8x32xf32>
      %212 = arith.subf %204, %211 : vector<8x32xf32>
      %213 = vector.broadcast %210 : vector<8x1xf32> to vector<8x32xf32>
      %214 = arith.subf %204, %213 : vector<8x32xf32>
      %215 = arith.mulf %212, %214 : vector<8x32xf32>
      %cst_99 = arith.constant dense<0.000000e+00> : vector<8xf32>
      %216 = vector.multi_reduction <add>, %215, %cst_99 [1] : vector<8x32xf32> to vector<8xf32>
      %217 = vector.shape_cast %216 : vector<8xf32> to vector<8x1xf32>
      %cst_100 = arith.constant 3.200000e+01 : f32
      %218 = vector.broadcast %cst_100 : f32 to vector<8x1xf32>
      %219 = arith.divf %217, %218 : vector<8x1xf32>
      %220 = vector.broadcast %210 : vector<8x1xf32> to vector<8x32xf32>
      %221 = arith.subf %204, %220 : vector<8x32xf32>
      %cst_101 = arith.constant 9.99999996E-13 : f32
      %222 = vector.broadcast %cst_101 : f32 to vector<8x1xf32>
      %223 = arith.addf %219, %222 : vector<8x1xf32>
      %224 = math.rsqrt %223 : vector<8x1xf32>
      %225 = vector.broadcast %224 : vector<8x1xf32> to vector<8x32xf32>
      %226 = arith.mulf %221, %225 : vector<8x32xf32>
      %227 = vector.broadcast %205 : vector<1x32xf32> to vector<8x32xf32>
      %228 = arith.mulf %226, %227 : vector<8x32xf32>
      %229 = vector.broadcast %206 : vector<1x32xf32> to vector<8x32xf32>
      %230 = arith.addf %228, %229 : vector<8x32xf32>
      %c0_102 = arith.constant 0 : index
      %c0_103 = arith.constant 0 : index
      %231 = vector.load %arg19[%c0_102, %c0_103] : memref<8x32xf32, #tpu.memory_space<vmem>>, vector<8x32xf32>
      tpu.vector_store %arg19[%c0_102, %c0_103], %230 {strides = array<i32>} : memref<8x32xf32, #tpu.memory_space<vmem>>, vector<8x32xf32>,
    } else {
    }
    %c0 = arith.constant 0 : index
    %c0_1 = arith.constant 0 : index
    %3 = vector.load %arg19[%c0, %c0_1] : memref<8x32xf32, #tpu.memory_space<vmem>>, vector<8x32xf32>
    %c0_2 = arith.constant 0 : index
    %c0_3 = arith.constant 0 : index
    %c0_4 = arith.constant 0 : index
    %4 = vector.load %arg6[%c0_2, %c0_3, %c0_4] : memref<1x32x96xbf16, #tpu.memory_space<vmem>>, vector<1x32x96xbf16>
    %5 = vector.shape_cast %4 : vector<1x32x96xbf16> to vector<32x96xbf16>
    %c0_5 = arith.constant 0 : index
    %c0_6 = arith.constant 0 : index
    %c0_7 = arith.constant 0 : index
    %6 = vector.load %arg7[%c0_5, %c0_6, %c0_7] : memref<1x1x96xf32, #tpu.memory_space<vmem>>, vector<1x1x96xf32>
    %7 = vector.shape_cast %6 : vector<1x1x96xf32> to vector<1x96xf32>
    %8 = arith.truncf %3 : vector<8x32xf32> to vector<8x32xbf16>
    %cst = arith.constant dense<0.000000e+00> : vector<8x96xf32>
    %9 = tpu.matmul %8, %5, %cst {dimension_numbers = #tpu.dot_dimension_numbers<[1], [0], [0], [1], [0, 0, 1, 1], [], []>} : vector<8x32xbf16>, vector<32x96xbf16>, vector<8x96xf32> -> vector<8x96xf32>
    %10 = vector.broadcast %7 : vector<1x96xf32> to vector<8x96xf32>
    %11 = arith.addf %9, %10 : vector<8x96xf32>
    %12 = arith.truncf %11 : vector<8x96xf32> to vector<8x96xbf16>
    %c0_8 = arith.constant 0 : index
    %c0_9 = arith.constant 0 : index
    %c0_10 = arith.constant 0 : index
    %13 = vector.load %arg3[%c0_8, %c0_9, %c0_10] : memref<1x1x8xf32, #tpu.memory_space<vmem>>, vector<1x1x8xf32>
    %14 = vector.shape_cast %13 : vector<1x1x8xf32> to vector<1x8xf32>
    %cst_11 = arith.constant 1.000000e+00 : f32
    %15 = vector.broadcast %cst_11 : f32 to vector<1x8xf32>
    %16 = arith.subf %15, %14 : vector<1x8xf32>
    %cst_12 = arith.constant -1.000000e+09 : f32
    %17 = vector.broadcast %cst_12 : f32 to vector<1x8xf32>
    %18 = arith.mulf %16, %17 : vector<1x8xf32>
    %19 = vector.extract_strided_slice %12 {offsets = [0, 0], sizes = [8, 8], strides = [1, 1]} : vector<8x96xbf16> to vector<8x8xbf16>
    %20 = vector.extract_strided_slice %12 {offsets = [0, 32], sizes = [8, 8], strides = [1, 1]} : vector<8x96xbf16> to vector<8x8xbf16>
    %21 = vector.extract_strided_slice %12 {offsets = [0, 64], sizes = [8, 8], strides = [1, 1]} : vector<8x96xbf16> to vector<8x8xbf16>
    %cst_13 = arith.constant dense<0.000000e+00> : vector<8x8xf32>
    %22 = tpu.matmul %19, %20, %cst_13 {dimension_numbers = #tpu.dot_dimension_numbers<[1], [1], [0], [0], [0, 0, 1, 0], [], []>} : vector<8x8xbf16>, vector<8x8xbf16>, vector<8x8xf32> -> vector<8x8xf32>
    %cst_14 = arith.constant 0.353553385 : f32
    %23 = vector.broadcast %cst_14 : f32 to vector<8x8xf32>
    %24 = arith.mulf %22, %23 : vector<8x8xf32>
    %25 = vector.broadcast %18 : vector<1x8xf32> to vector<8x8xf32>
    %26 = arith.addf %24, %25 : vector<8x8xf32>
    %cst_15 = arith.constant dense<0xFF800000> : vector<8xf32>
    %27 = vector.multi_reduction <maximumf>, %26, %cst_15 [1] : vector<8x8xf32> to vector<8xf32>
    %28 = vector.shape_cast %27 : vector<8xf32> to vector<8x1xf32>
    %29 = vector.broadcast %28 : vector<8x1xf32> to vector<8x8xf32>
    %30 = arith.subf %26, %29 : vector<8x8xf32>
    %31 = math.exp %30 : vector<8x8xf32>
    %cst_16 = arith.constant dense<0.000000e+00> : vector<8xf32>
    %32 = vector.multi_reduction <add>, %31, %cst_16 [1] : vector<8x8xf32> to vector<8xf32>
    %33 = vector.shape_cast %32 : vector<8xf32> to vector<8x1xf32>
    %34 = tpu.reciprocal %33 {approx = true} : vector<8x1xf32> -> vector<8x1xf32>
    %35 = vector.broadcast %34 : vector<8x1xf32> to vector<8x8xf32>
    %36 = arith.mulf %31, %35 : vector<8x8xf32>
    %37 = arith.truncf %36 : vector<8x8xf32> to vector<8x8xbf16>
    %cst_17 = arith.constant dense<0.000000e+00> : vector<8x8xf32>
    %38 = tpu.matmul %37, %21, %cst_17 {dimension_numbers = #tpu.dot_dimension_numbers<[1], [0], [0], [1], [0, 0, 1, 1], [], []>} : vector<8x8xbf16>, vector<8x8xbf16>, vector<8x8xf32> -> vector<8x8xf32>
    %c0_18 = arith.constant 0 : index
    %c0_19 = arith.constant 0 : index
    %39 = vector.load %arg20[%c0_18, %c0_19] : memref<8x32xf32, #tpu.memory_space<vmem>>, vector<8x8xf32>
    tpu.vector_store %arg20[%c0_18, %c0_19], %38 {strides = array<i32>} : memref<8x32xf32, #tpu.memory_space<vmem>>, vector<8x8xf32>,
    %40 = vector.extract_strided_slice %12 {offsets = [0, 8], sizes = [8, 8], strides = [1, 1]} : vector<8x96xbf16> to vector<8x8xbf16>
    %41 = vector.extract_strided_slice %12 {offsets = [0, 40], sizes = [8, 8], strides = [1, 1]} : vector<8x96xbf16> to vector<8x8xbf16>
    %42 = vector.extract_strided_slice %12 {offsets = [0, 72], sizes = [8, 8], strides = [1, 1]} : vector<8x96xbf16> to vector<8x8xbf16>
    %cst_20 = arith.constant dense<0.000000e+00> : vector<8x8xf32>
    %43 = tpu.matmul %40, %41, %cst_20 {dimension_numbers = #tpu.dot_dimension_numbers<[1], [1], [0], [0], [0, 0, 1, 0], [], []>} : vector<8x8xbf16>, vector<8x8xbf16>, vector<8x8xf32> -> vector<8x8xf32>
    %cst_21 = arith.constant 0.353553385 : f32
    %44 = vector.broadcast %cst_21 : f32 to vector<8x8xf32>
    %45 = arith.mulf %43, %44 : vector<8x8xf32>
    %46 = vector.broadcast %18 : vector<1x8xf32> to vector<8x8xf32>
    %47 = arith.addf %45, %46 : vector<8x8xf32>
    %cst_22 = arith.constant dense<0xFF800000> : vector<8xf32>
    %48 = vector.multi_reduction <maximumf>, %47, %cst_22 [1] : vector<8x8xf32> to vector<8xf32>
    %49 = vector.shape_cast %48 : vector<8xf32> to vector<8x1xf32>
    %50 = vector.broadcast %49 : vector<8x1xf32> to vector<8x8xf32>
    %51 = arith.subf %47, %50 : vector<8x8xf32>
    %52 = math.exp %51 : vector<8x8xf32>
    %cst_23 = arith.constant dense<0.000000e+00> : vector<8xf32>
    %53 = vector.multi_reduction <add>, %52, %cst_23 [1] : vector<8x8xf32> to vector<8xf32>
    %54 = vector.shape_cast %53 : vector<8xf32> to vector<8x1xf32>
    %55 = tpu.reciprocal %54 {approx = true} : vector<8x1xf32> -> vector<8x1xf32>
    %56 = vector.broadcast %55 : vector<8x1xf32> to vector<8x8xf32>
    %57 = arith.mulf %52, %56 : vector<8x8xf32>
    %58 = arith.truncf %57 : vector<8x8xf32> to vector<8x8xbf16>
    %cst_24 = arith.constant dense<0.000000e+00> : vector<8x8xf32>
    %59 = tpu.matmul %58, %42, %cst_24 {dimension_numbers = #tpu.dot_dimension_numbers<[1], [0], [0], [1], [0, 0, 1, 1], [], []>} : vector<8x8xbf16>, vector<8x8xbf16>, vector<8x8xf32> -> vector<8x8xf32>
    %c0_25 = arith.constant 0 : index
    %c8 = arith.constant 8 : index
    %60 = vector.load %arg20[%c0_25, %c8] : memref<8x32xf32, #tpu.memory_space<vmem>>, vector<8x8xf32>
    tpu.vector_store %arg20[%c0_25, %c8], %59 {strides = array<i32>} : memref<8x32xf32, #tpu.memory_space<vmem>>, vector<8x8xf32>,
    %61 = vector.extract_strided_slice %12 {offsets = [0, 16], sizes = [8, 8], strides = [1, 1]} : vector<8x96xbf16> to vector<8x8xbf16>
    %62 = vector.extract_strided_slice %12 {offsets = [0, 48], sizes = [8, 8], strides = [1, 1]} : vector<8x96xbf16> to vector<8x8xbf16>
    %63 = vector.extract_strided_slice %12 {offsets = [0, 80], sizes = [8, 8], strides = [1, 1]} : vector<8x96xbf16> to vector<8x8xbf16>
    %cst_26 = arith.constant dense<0.000000e+00> : vector<8x8xf32>
    %64 = tpu.matmul %61, %62, %cst_26 {dimension_numbers = #tpu.dot_dimension_numbers<[1], [1], [0], [0], [0, 0, 1, 0], [], []>} : vector<8x8xbf16>, vector<8x8xbf16>, vector<8x8xf32> -> vector<8x8xf32>
    %cst_27 = arith.constant 0.353553385 : f32
    %65 = vector.broadcast %cst_27 : f32 to vector<8x8xf32>
    %66 = arith.mulf %64, %65 : vector<8x8xf32>
    %67 = vector.broadcast %18 : vector<1x8xf32> to vector<8x8xf32>
    %68 = arith.addf %66, %67 : vector<8x8xf32>
    %cst_28 = arith.constant dense<0xFF800000> : vector<8xf32>
    %69 = vector.multi_reduction <maximumf>, %68, %cst_28 [1] : vector<8x8xf32> to vector<8xf32>
    %70 = vector.shape_cast %69 : vector<8xf32> to vector<8x1xf32>
    %71 = vector.broadcast %70 : vector<8x1xf32> to vector<8x8xf32>
    %72 = arith.subf %68, %71 : vector<8x8xf32>
    %73 = math.exp %72 : vector<8x8xf32>
    %cst_29 = arith.constant dense<0.000000e+00> : vector<8xf32>
    %74 = vector.multi_reduction <add>, %73, %cst_29 [1] : vector<8x8xf32> to vector<8xf32>
    %75 = vector.shape_cast %74 : vector<8xf32> to vector<8x1xf32>
    %76 = tpu.reciprocal %75 {approx = true} : vector<8x1xf32> -> vector<8x1xf32>
    %77 = vector.broadcast %76 : vector<8x1xf32> to vector<8x8xf32>
    %78 = arith.mulf %73, %77 : vector<8x8xf32>
    %79 = arith.truncf %78 : vector<8x8xf32> to vector<8x8xbf16>
    %cst_30 = arith.constant dense<0.000000e+00> : vector<8x8xf32>
    %80 = tpu.matmul %79, %63, %cst_30 {dimension_numbers = #tpu.dot_dimension_numbers<[1], [0], [0], [1], [0, 0, 1, 1], [], []>} : vector<8x8xbf16>, vector<8x8xbf16>, vector<8x8xf32> -> vector<8x8xf32>
    %c0_31 = arith.constant 0 : index
    %c16 = arith.constant 16 : index
    %81 = vector.load %arg20[%c0_31, %c16] : memref<8x32xf32, #tpu.memory_space<vmem>>, vector<8x8xf32>
    tpu.vector_store %arg20[%c0_31, %c16], %80 {strides = array<i32>} : memref<8x32xf32, #tpu.memory_space<vmem>>, vector<8x8xf32>,
    %82 = vector.extract_strided_slice %12 {offsets = [0, 24], sizes = [8, 8], strides = [1, 1]} : vector<8x96xbf16> to vector<8x8xbf16>
    %83 = vector.extract_strided_slice %12 {offsets = [0, 56], sizes = [8, 8], strides = [1, 1]} : vector<8x96xbf16> to vector<8x8xbf16>
    %84 = vector.extract_strided_slice %12 {offsets = [0, 88], sizes = [8, 8], strides = [1, 1]} : vector<8x96xbf16> to vector<8x8xbf16>
    %cst_32 = arith.constant dense<0.000000e+00> : vector<8x8xf32>
    %85 = tpu.matmul %82, %83, %cst_32 {dimension_numbers = #tpu.dot_dimension_numbers<[1], [1], [0], [0], [0, 0, 1, 0], [], []>} : vector<8x8xbf16>, vector<8x8xbf16>, vector<8x8xf32> -> vector<8x8xf32>
    %cst_33 = arith.constant 0.353553385 : f32
    %86 = vector.broadcast %cst_33 : f32 to vector<8x8xf32>
    %87 = arith.mulf %85, %86 : vector<8x8xf32>
    %88 = vector.broadcast %18 : vector<1x8xf32> to vector<8x8xf32>
    %89 = arith.addf %87, %88 : vector<8x8xf32>
    %cst_34 = arith.constant dense<0xFF800000> : vector<8xf32>
    %90 = vector.multi_reduction <maximumf>, %89, %cst_34 [1] : vector<8x8xf32> to vector<8xf32>
    %91 = vector.shape_cast %90 : vector<8xf32> to vector<8x1xf32>
    %92 = vector.broadcast %91 : vector<8x1xf32> to vector<8x8xf32>
    %93 = arith.subf %89, %92 : vector<8x8xf32>
    %94 = math.exp %93 : vector<8x8xf32>
    %cst_35 = arith.constant dense<0.000000e+00> : vector<8xf32>
    %95 = vector.multi_reduction <add>, %94, %cst_35 [1] : vector<8x8xf32> to vector<8xf32>
    %96 = vector.shape_cast %95 : vector<8xf32> to vector<8x1xf32>
    %97 = tpu.reciprocal %96 {approx = true} : vector<8x1xf32> -> vector<8x1xf32>
    %98 = vector.broadcast %97 : vector<8x1xf32> to vector<8x8xf32>
    %99 = arith.mulf %94, %98 : vector<8x8xf32>
    %100 = arith.truncf %99 : vector<8x8xf32> to vector<8x8xbf16>
    %cst_36 = arith.constant dense<0.000000e+00> : vector<8x8xf32>
    %101 = tpu.matmul %100, %84, %cst_36 {dimension_numbers = #tpu.dot_dimension_numbers<[1], [0], [0], [1], [0, 0, 1, 1], [], []>} : vector<8x8xbf16>, vector<8x8xbf16>, vector<8x8xf32> -> vector<8x8xf32>
    %c0_37 = arith.constant 0 : index
    %c24 = arith.constant 24 : index
    %102 = vector.load %arg20[%c0_37, %c24] : memref<8x32xf32, #tpu.memory_space<vmem>>, vector<8x8xf32>
    tpu.vector_store %arg20[%c0_37, %c24], %101 {strides = array<i32>} : memref<8x32xf32, #tpu.memory_space<vmem>>, vector<8x8xf32>,
    %c0_38 = arith.constant 0 : index
    %c0_39 = arith.constant 0 : index
    %103 = vector.load %arg20[%c0_38, %c0_39] : memref<8x32xf32, #tpu.memory_space<vmem>>, vector<8x32xf32>
    %c0_40 = arith.constant 0 : index
    %c0_41 = arith.constant 0 : index
    %c0_42 = arith.constant 0 : index
    %104 = vector.load %arg8[%c0_40, %c0_41, %c0_42] : memref<1x32x32xbf16, #tpu.memory_space<vmem>>, vector<1x32x32xbf16>
    %105 = vector.shape_cast %104 : vector<1x32x32xbf16> to vector<32x32xbf16>
    %c0_43 = arith.constant 0 : index
    %c0_44 = arith.constant 0 : index
    %c0_45 = arith.constant 0 : index
    %106 = vector.load %arg9[%c0_43, %c0_44, %c0_45] : memref<1x1x32xf32, #tpu.memory_space<vmem>>, vector<1x1x32xf32>
    %107 = vector.shape_cast %106 : vector<1x1x32xf32> to vector<1x32xf32>
    %108 = arith.truncf %103 : vector<8x32xf32> to vector<8x32xbf16>
    %cst_46 = arith.constant dense<0.000000e+00> : vector<8x32xf32>
    %109 = tpu.matmul %108, %105, %cst_46 {dimension_numbers = #tpu.dot_dimension_numbers<[1], [0], [0], [1], [0, 0, 1, 1], [], []>} : vector<8x32xbf16>, vector<32x32xbf16>, vector<8x32xf32> -> vector<8x32xf32>
    %110 = vector.broadcast %107 : vector<1x32xf32> to vector<8x32xf32>
    %111 = arith.addf %109, %110 : vector<8x32xf32>
    %112 = arith.addf %111, %3 : vector<8x32xf32>
    %c0_47 = arith.constant 0 : index
    %c0_48 = arith.constant 0 : index
    %c0_49 = arith.constant 0 : index
    %113 = vector.load %arg10[%c0_47, %c0_48, %c0_49] : memref<1x1x32xf32, #tpu.memory_space<vmem>>, vector<1x1x32xf32>
    %114 = vector.shape_cast %113 : vector<1x1x32xf32> to vector<1x32xf32>
    %c0_50 = arith.constant 0 : index
    %c0_51 = arith.constant 0 : index
    %c0_52 = arith.constant 0 : index
    %115 = vector.load %arg11[%c0_50, %c0_51, %c0_52] : memref<1x1x32xf32, #tpu.memory_space<vmem>>, vector<1x1x32xf32>
    %116 = vector.shape_cast %115 : vector<1x1x32xf32> to vector<1x32xf32>
    %cst_53 = arith.constant dense<0.000000e+00> : vector<8xf32>
    %117 = vector.multi_reduction <add>, %112, %cst_53 [1] : vector<8x32xf32> to vector<8xf32>
    %118 = vector.shape_cast %117 : vector<8xf32> to vector<8x1xf32>
    %cst_54 = arith.constant 3.200000e+01 : f32
    %119 = vector.broadcast %cst_54 : f32 to vector<8x1xf32>
    %120 = arith.divf %118, %119 : vector<8x1xf32>
    %121 = vector.broadcast %120 : vector<8x1xf32> to vector<8x32xf32>
    %122 = arith.subf %112, %121 : vector<8x32xf32>
    %123 = vector.broadcast %120 : vector<8x1xf32> to vector<8x32xf32>
    %124 = arith.subf %112, %123 : vector<8x32xf32>
    %125 = arith.mulf %122, %124 : vector<8x32xf32>
    %cst_55 = arith.constant dense<0.000000e+00> : vector<8xf32>
    %126 = vector.multi_reduction <add>, %125, %cst_55 [1] : vector<8x32xf32> to vector<8xf32>
    %127 = vector.shape_cast %126 : vector<8xf32> to vector<8x1xf32>
    %cst_56 = arith.constant 3.200000e+01 : f32
    %128 = vector.broadcast %cst_56 : f32 to vector<8x1xf32>
    %129 = arith.divf %127, %128 : vector<8x1xf32>
    %130 = vector.broadcast %120 : vector<8x1xf32> to vector<8x32xf32>
    %131 = arith.subf %112, %130 : vector<8x32xf32>
    %cst_57 = arith.constant 9.99999996E-13 : f32
    %132 = vector.broadcast %cst_57 : f32 to vector<8x1xf32>
    %133 = arith.addf %129, %132 : vector<8x1xf32>
    %134 = math.rsqrt %133 : vector<8x1xf32>
    %135 = vector.broadcast %134 : vector<8x1xf32> to vector<8x32xf32>
    %136 = arith.mulf %131, %135 : vector<8x32xf32>
    %137 = vector.broadcast %114 : vector<1x32xf32> to vector<8x32xf32>
    %138 = arith.mulf %136, %137 : vector<8x32xf32>
    %139 = vector.broadcast %116 : vector<1x32xf32> to vector<8x32xf32>
    %140 = arith.addf %138, %139 : vector<8x32xf32>
    %c0_58 = arith.constant 0 : index
    %c0_59 = arith.constant 0 : index
    %c0_60 = arith.constant 0 : index
    %141 = vector.load %arg12[%c0_58, %c0_59, %c0_60] : memref<1x32x64xbf16, #tpu.memory_space<vmem>>, vector<1x32x64xbf16>
    %142 = vector.shape_cast %141 : vector<1x32x64xbf16> to vector<32x64xbf16>
    %c0_61 = arith.constant 0 : index
    %c0_62 = arith.constant 0 : index
    %c0_63 = arith.constant 0 : index
    %143 = vector.load %arg13[%c0_61, %c0_62, %c0_63] : memref<1x1x64xf32, #tpu.memory_space<vmem>>, vector<1x1x64xf32>
    %144 = vector.shape_cast %143 : vector<1x1x64xf32> to vector<1x64xf32>
    %145 = arith.truncf %140 : vector<8x32xf32> to vector<8x32xbf16>
    %cst_64 = arith.constant dense<0.000000e+00> : vector<8x64xf32>
    %146 = tpu.matmul %145, %142, %cst_64 {dimension_numbers = #tpu.dot_dimension_numbers<[1], [0], [0], [1], [0, 0, 1, 1], [], []>} : vector<8x32xbf16>, vector<32x64xbf16>, vector<8x64xf32> -> vector<8x64xf32>
    %147 = vector.broadcast %144 : vector<1x64xf32> to vector<8x64xf32>
    %148 = arith.addf %146, %147 : vector<8x64xf32>
    %cst_65 = arith.constant 5.000000e-01 : f32
    %149 = vector.broadcast %cst_65 : f32 to vector<8x64xf32>
    %150 = arith.mulf %149, %148 : vector<8x64xf32>
    %cst_66 = arith.constant 4.471500e-02 : f32
    %151 = vector.broadcast %cst_66 : f32 to vector<8x64xf32>
    %152 = arith.mulf %151, %148 : vector<8x64xf32>
    %153 = arith.mulf %152, %148 : vector<8x64xf32>
    %154 = arith.mulf %153, %148 : vector<8x64xf32>
    %155 = arith.addf %148, %154 : vector<8x64xf32>
    %cst_67 = arith.constant 0.797884583 : f32
    %156 = vector.broadcast %cst_67 : f32 to vector<8x64xf32>
    %157 = arith.mulf %156, %155 : vector<8x64xf32>
    %158 = math.tanh %157 : vector<8x64xf32>
    %cst_68 = arith.constant 1.000000e+00 : f32
    %159 = vector.broadcast %cst_68 : f32 to vector<8x64xf32>
    %160 = arith.addf %159, %158 : vector<8x64xf32>
    %161 = arith.mulf %150, %160 : vector<8x64xf32>
    %c0_69 = arith.constant 0 : index
    %c0_70 = arith.constant 0 : index
    %c0_71 = arith.constant 0 : index
    %162 = vector.load %arg14[%c0_69, %c0_70, %c0_71] : memref<1x64x32xbf16, #tpu.memory_space<vmem>>, vector<1x64x32xbf16>
    %163 = vector.shape_cast %162 : vector<1x64x32xbf16> to vector<64x32xbf16>
    %c0_72 = arith.constant 0 : index
    %c0_73 = arith.constant 0 : index
    %c0_74 = arith.constant 0 : index
    %164 = vector.load %arg15[%c0_72, %c0_73, %c0_74] : memref<1x1x32xf32, #tpu.memory_space<vmem>>, vector<1x1x32xf32>
    %165 = vector.shape_cast %164 : vector<1x1x32xf32> to vector<1x32xf32>
    %166 = arith.truncf %161 : vector<8x64xf32> to vector<8x64xbf16>
    %cst_75 = arith.constant dense<0.000000e+00> : vector<8x32xf32>
    %167 = tpu.matmul %166, %163, %cst_75 {dimension_numbers = #tpu.dot_dimension_numbers<[1], [0], [0], [1], [0, 0, 1, 1], [], []>} : vector<8x64xbf16>, vector<64x32xbf16>, vector<8x32xf32> -> vector<8x32xf32>
    %168 = vector.broadcast %165 : vector<1x32xf32> to vector<8x32xf32>
    %169 = arith.addf %167, %168 : vector<8x32xf32>
    %170 = arith.addf %169, %140 : vector<8x32xf32>
    %c0_76 = arith.constant 0 : index
    %c0_77 = arith.constant 0 : index
    %c0_78 = arith.constant 0 : index
    %171 = vector.load %arg16[%c0_76, %c0_77, %c0_78] : memref<1x1x32xf32, #tpu.memory_space<vmem>>, vector<1x1x32xf32>
    %172 = vector.shape_cast %171 : vector<1x1x32xf32> to vector<1x32xf32>
    %c0_79 = arith.constant 0 : index
    %c0_80 = arith.constant 0 : index
    %c0_81 = arith.constant 0 : index
    %173 = vector.load %arg17[%c0_79, %c0_80, %c0_81] : memref<1x1x32xf32, #tpu.memory_space<vmem>>, vector<1x1x32xf32>
    %174 = vector.shape_cast %173 : vector<1x1x32xf32> to vector<1x32xf32>
    %cst_82 = arith.constant dense<0.000000e+00> : vector<8xf32>
    %175 = vector.multi_reduction <add>, %170, %cst_82 [1] : vector<8x32xf32> to vector<8xf32>
    %176 = vector.shape_cast %175 : vector<8xf32> to vector<8x1xf32>
    %cst_83 = arith.constant 3.200000e+01 : f32
    %177 = vector.broadcast %cst_83 : f32 to vector<8x1xf32>
    %178 = arith.divf %176, %177 : vector<8x1xf32>
    %179 = vector.broadcast %178 : vector<8x1xf32> to vector<8x32xf32>
    %180 = arith.subf %170, %179 : vector<8x32xf32>
    %181 = vector.broadcast %178 : vector<8x1xf32> to vector<8x32xf32>
    %182 = arith.subf %170, %181 : vector<8x32xf32>
    %183 = arith.mulf %180, %182 : vector<8x32xf32>
    %cst_84 = arith.constant dense<0.000000e+00> : vector<8xf32>
    %184 = vector.multi_reduction <add>, %183, %cst_84 [1] : vector<8x32xf32> to vector<8xf32>
    %185 = vector.shape_cast %184 : vector<8xf32> to vector<8x1xf32>
    %cst_85 = arith.constant 3.200000e+01 : f32
    %186 = vector.broadcast %cst_85 : f32 to vector<8x1xf32>
    %187 = arith.divf %185, %186 : vector<8x1xf32>
    %188 = vector.broadcast %178 : vector<8x1xf32> to vector<8x32xf32>
    %189 = arith.subf %170, %188 : vector<8x32xf32>
    %cst_86 = arith.constant 9.99999996E-13 : f32
    %190 = vector.broadcast %cst_86 : f32 to vector<8x1xf32>
    %191 = arith.addf %187, %190 : vector<8x1xf32>
    %192 = math.rsqrt %191 : vector<8x1xf32>
    %193 = vector.broadcast %192 : vector<8x1xf32> to vector<8x32xf32>
    %194 = arith.mulf %189, %193 : vector<8x32xf32>
    %195 = vector.broadcast %172 : vector<1x32xf32> to vector<8x32xf32>
    %196 = arith.mulf %194, %195 : vector<8x32xf32>
    %197 = vector.broadcast %174 : vector<1x32xf32> to vector<8x32xf32>
    %198 = arith.addf %196, %197 : vector<8x32xf32>
    %c0_87 = arith.constant 0 : index
    %c0_88 = arith.constant 0 : index
    %199 = vector.load %arg19[%c0_87, %c0_88] : memref<8x32xf32, #tpu.memory_space<vmem>>, vector<8x32xf32>
    tpu.vector_store %arg19[%c0_87, %c0_88], %198 {strides = array<i32>} : memref<8x32xf32, #tpu.memory_space<vmem>>, vector<8x32xf32>,
    %c1_i32 = arith.constant 1 : i32
    %200 = arith.cmpi eq, %arg1, %c1_i32 : i32
    %201 = arith.extui %200 : i1 to i32
    %c0_i32_89 = arith.constant 0 : i32
    %202 = arith.cmpi ne, %201, %c0_i32_89 : i32
    scf.if %202 {
      %c0_90 = arith.constant 0 : index
      %c0_91 = arith.constant 0 : index
      %c0_92 = arith.constant 0 : index
      %203 = vector.load %arg18[%c0_90, %c0_91, %c0_92] : memref<1x8x32xf32, #tpu.memory_space<vmem>>, vector<1x8x32xf32>
      %204 = vector.shape_cast %203 : vector<1x8x32xf32> to vector<8x32xf32>
      %205 = vector.shape_cast %198 : vector<8x32xf32> to vector<1x8x32xf32>
      tpu.vector_store %arg18[%c0_90, %c0_91, %c0_92], %205 {strides = array<i32>} : memref<1x8x32xf32, #tpu.memory_space<vmem>>, vector<1x8x32xf32>,
    } else {
    }
    return
  }
  func.func @transform_0(%arg0: i32, %arg1: i32) -> (i32, i32, i32) {
    %c0_i32 = arith.constant 0 : i32
    %c0_i32_0 = arith.constant 0 : i32
    %c0_i32_1 = arith.constant 0 : i32
    return %arg0, %c0_i32, %c0_i32_0 : i32, i32, i32
  }
  func.func @transform_1(%arg0: i32, %arg1: i32) -> (i32, i32, i32) {
    %c0_i32 = arith.constant 0 : i32
    %c0_i32_0 = arith.constant 0 : i32
    %c0_i32_1 = arith.constant 0 : i32
    return %arg0, %c0_i32, %c0_i32_0 : i32, i32, i32
  }
  func.func @transform_2(%arg0: i32, %arg1: i32) -> (i32, i32) {
    %c0_i32 = arith.constant 0 : i32
    %c0_i32_0 = arith.constant 0 : i32
    %c0_i32_1 = arith.constant 0 : i32
    return %c0_i32, %c0_i32_0 : i32, i32
  }
  func.func @transform_3(%arg0: i32, %arg1: i32) -> (i32, i32) {
    %c0_i32 = arith.constant 0 : i32
    %c0_i32_0 = arith.constant 0 : i32
    %c0_i32_1 = arith.constant 0 : i32
    return %c0_i32, %c0_i32_0 : i32, i32
  }
  func.func @transform_4(%arg0: i32, %arg1: i32) -> (i32, i32, i32) {
    %c0_i32 = arith.constant 0 : i32
    %c0_i32_0 = arith.constant 0 : i32
    %c0_i32_1 = arith.constant 0 : i32
    return %arg1, %c0_i32, %c0_i32_0 : i32, i32, i32
  }
  func.func @transform_5(%arg0: i32, %arg1: i32) -> (i32, i32, i32) {
    %c0_i32 = arith.constant 0 : i32
    %c0_i32_0 = arith.constant 0 : i32
    %c0_i32_1 = arith.constant 0 : i32
    return %arg1, %c0_i32, %c0_i32_0 : i32, i32, i32
  }
  func.func @transform_6(%arg0: i32, %arg1: i32) -> (i32, i32, i32) {
    %c0_i32 = arith.constant 0 : i32
    %c0_i32_0 = arith.constant 0 : i32
    %c0_i32_1 = arith.constant 0 : i32
    return %arg1, %c0_i32, %c0_i32_0 : i32, i32, i32
  }
  func.func @transform_7(%arg0: i32, %arg1: i32) -> (i32, i32, i32) {
    %c0_i32 = arith.constant 0 : i32
    %c0_i32_0 = arith.constant 0 : i32
    %c0_i32_1 = arith.constant 0 : i32
    return %arg1, %c0_i32, %c0_i32_0 : i32, i32, i32
  }
  func.func @transform_8(%arg0: i32, %arg1: i32) -> (i32, i32, i32) {
    %c0_i32 = arith.constant 0 : i32
    %c0_i32_0 = arith.constant 0 : i32
    %c0_i32_1 = arith.constant 0 : i32
    return %arg1, %c0_i32, %c0_i32_0 : i32, i32, i32
  }
  func.func @transform_9(%arg0: i32, %arg1: i32) -> (i32, i32, i32) {
    %c0_i32 = arith.constant 0 : i32
    %c0_i32_0 = arith.constant 0 : i32
    %c0_i32_1 = arith.constant 0 : i32
    return %arg1, %c0_i32, %c0_i32_0 : i32, i32, i32
  }
  func.func @transform_10(%arg0: i32, %arg1: i32) -> (i32, i32, i32) {
    %c0_i32 = arith.constant 0 : i32
    %c0_i32_0 = arith.constant 0 : i32
    %c0_i32_1 = arith.constant 0 : i32
    return %arg1, %c0_i32, %c0_i32_0 : i32, i32, i32
  }
  func.func @transform_11(%arg0: i32, %arg1: i32) -> (i32, i32, i32) {
    %c0_i32 = arith.constant 0 : i32
    %c0_i32_0 = arith.constant 0 : i32
    %c0_i32_1 = arith.constant 0 : i32
    return %arg1, %c0_i32, %c0_i32_0 : i32, i32, i32
  }
  func.func @transform_12(%arg0: i32, %arg1: i32) -> (i32, i32, i32) {
    %c0_i32 = arith.constant 0 : i32
    %c0_i32_0 = arith.constant 0 : i32
    %c0_i32_1 = arith.constant 0 : i32
    return %arg1, %c0_i32, %c0_i32_0 : i32, i32, i32
  }
  func.func @transform_13(%arg0: i32, %arg1: i32) -> (i32, i32, i32) {
    %c0_i32 = arith.constant 0 : i32
    %c0_i32_0 = arith.constant 0 : i32
    %c0_i32_1 = arith.constant 0 : i32
    return %arg1, %c0_i32, %c0_i32_0 : i32, i32, i32
  }
  func.func @transform_14(%arg0: i32, %arg1: i32) -> (i32, i32, i32) {
    %c0_i32 = arith.constant 0 : i32
    %c0_i32_0 = arith.constant 0 : i32
    %c0_i32_1 = arith.constant 0 : i32
    return %arg1, %c0_i32, %c0_i32_0 : i32, i32, i32
  }
  func.func @transform_15(%arg0: i32, %arg1: i32) -> (i32, i32, i32) {
    %c0_i32 = arith.constant 0 : i32
    %c0_i32_0 = arith.constant 0 : i32
    %c0_i32_1 = arith.constant 0 : i32
    return %arg1, %c0_i32, %c0_i32_0 : i32, i32, i32
  }
  func.func @transform_16(%arg0: i32, %arg1: i32) -> (i32, i32, i32) {
    %c0_i32 = arith.constant 0 : i32
    %c0_i32_0 = arith.constant 0 : i32
    %c0_i32_1 = arith.constant 0 : i32
    return %arg0, %c0_i32, %c0_i32_0 : i32, i32, i32
  }
}

</mosaic_0001>

<bundles_post_ra>
// kernel: bert_classifier_forward.1
= control target key start
LH: loop header
LB: loop body
LE: loop exit
PB: predicated region body
PF: predicated region fallthrough
CT: control target
= control target key end

     0   :  { %s2208_s21 = smov 0   ;;  %s2210_s22 = smov 0   ;;  %s2490_s0 = inlined_call_operand.vmem [shape: f32[2,8,32], index: 0, kind: input, shape index: {}]   ;;  %s2491_s1 = inlined_call_operand.vmem [shape: f32[2,1,8], index: 1, kind: input, shape index: {}]   ;;  %s2492_s2 = inlined_call_operand.vmem [shape: f32[1,32], index: 2, kind: input, shape index: {}]   ;;  %s2493_s3 = inlined_call_operand.vmem [shape: f32[1,32], index: 3, kind: input, shape index: {}]   ;;  %s2494_s4 = inlined_call_operand.vmem [shape: bf16[2,32,96], index: 4, kind: input, shape index: {}]   ;;  %s2495_s5 = inlined_call_operand.vmem [shape: f32[2,1,96], index: 5, kind: input, shape index: {}]   ;;  %s2496_s6 = inlined_call_operand.vmem [shape: bf16[2,32,32], index: 6, kind: input, shape index: {}]   ;;  %s2497_s7 = inlined_call_operand.vmem [shape: f32[2,1,32], index: 7, kind: input, shape index: {}]   ;;  %s2498_s8 = inlined_call_operand.vmem [shape: f32[2,1,32], index: 8, kind: input, shape index: {}]   ;;  %s2499_s9 = inlined_call_operand.vmem [shape: f32[2,1,32], index: 9, kind: input, shape index: {}]   ;;  %s2500_s10 = inlined_call_operand.vmem [shape: bf16[2,32,64], index: 10, kind: input, shape index: {}]   ;;  %s2501_s11 = inlined_call_operand.vmem [shape: f32[2,1,64], index: 11, kind: input, shape index: {}]   ;;  %s2502_s12 = inlined_call_operand.vmem [shape: bf16[2,64,32], index: 12, kind: input, shape index: {}]   ;;  %s2503_s13 = inlined_call_operand.vmem [shape: f32[2,1,32], index: 13, kind: input, shape index: {}]   ;;  %s2504_s14 = inlined_call_operand.vmem [shape: f32[2,1,32], index: 14, kind: input, shape index: {}]   ;;  %s2505_s15 = inlined_call_operand.vmem [shape: f32[2,1,32], index: 15, kind: input, shape index: {}]   ;;  %s2506_s16 = inlined_call_operand.vmem [shape: f32[2,8,32], index: 16, kind: output, shape index: {}]  }
   0x1   :  { %2512 = sst [smem:[#allocation11_spill]] %s2490_s0  ;;  %s2212_s23 = smov 0  }
   0x2   :  { %2513 = sst [smem:[#allocation12_spill]] %s2491_s1  ;;  %s2214_s24 = smov 0  }
   0x3   :  { %2514 = sst [smem:[#allocation13_spill]] %s2492_s2  ;;  %s2216_s25 = smov 0  }
   0x4   :  { %2515 = sst [smem:[#allocation14_spill]] %s2493_s3 }
   0x5   :  { %2516 = sst [smem:[#allocation15_spill]] %s2494_s4 }
   0x6   :  { %2517 = sst [smem:[#allocation16_spill]] %s2496_s6 }
   0x7   :  { %2518 = sst [smem:[#allocation17_spill]] %s2500_s10 }
   0x8   :  { %2519 = sst [smem:[#allocation18_spill]] %s2501_s11 }
   0x9   :  { %2520 = sst [smem:[#allocation19_spill]] %s2505_s15 }
   0xa   :  { %2521 = sst [smem:[#allocation20_spill]] %s2506_s16 }
   0xb LB: > { %2522 = sst [smem:[#allocation4_spill]] %s2089_s21  ;;  %s35_s26 = sadd.s32 1, %s2097_s23  ;;  %s2105_s25 = sphi %s2216_s25, %s26_s25   ;;  %s2101_s24 = sphi %s2214_s24, %s2555_s24   ;;  %s2097_s23 = sphi %s2212_s23, %s2554_s23   ;;  %s2093_s22 = sphi %s2210_s22, %s2553_s22   ;;  %s2089_s21 = sphi %s2208_s21, %s2552_s21  }
   0xc   : > { %2523 = sst [smem:[#allocation5_spill]] %s2097_s23  ;;  %s38_s27 = sadd.s32 1, %s2101_s24 }
   0xd   : > { %2524 = sst [smem:[#allocation6_spill]] %s2101_s24  ;;  %p36_p0 = scmp.ge.s32.totalorder %s35_s26, 2 }
   0xe   : > { %2525 = sst [smem:[#allocation7_spill]] %s2105_s25  ;;  %p1812_p1 = scmp.ge.s32.totalorder %s2105_s25, 1 }
   0xf   : > { %p585_p2 = scmp.lt.s32.totalorder %s2105_s25, 5  ;;  %s2557_s26 = smov (%p36_p0, %s35_s26), 0 }
  0x10   : > { %2526 = sst [smem:[#allocation8_spill]] %s2557_s26  ;;  %s2559_s27 = smov (!%p36_p0, %s38_s27), %s2101_s24 }
  0x11   : > { %p586_p3 = pnand %p1812_p1, %p585_p2  ;;  %p40_p4 = scmp.ge.s32.totalorder %s2559_s27, 2 }
  0x13   : > { %s2561_s27 = smov (%p40_p4, %s2559_s27), 0  ;;  %589 = sbr.rel (%p586_p3) target bundleno = 2818 (0xb02), region = 84 }
  0x14   : > { %2527 = sst [smem:[#allocation9_spill]] %s2561_s27 }
  0x18   : > { %p680_p5 = scmp.lt.s32.totalorder %s2093_s22, 1  ;;  %p687_p6 = scmp.lt.s32.totalorder %s2089_s21, 1 }
  0x19   : > { %s2530_s20 = sld [smem:[#allocation11_spill]] }
  0x1a   : > { %s2563_s22 = smov (!%p680_p5, %s2093_s22), 1  ;;  %s2531_s4 = sld [smem:[#allocation15_spill]] }
  0x1b   : > { %2528 = sst [smem:[#allocation10_spill]] %s2563_s22  ;;  %s1813_s29 = sshll.u32 %s2563_s22, 3 }
  0x1c   : > { %s2244_s28 = scalar_select %p687_p6, %s2089_s21, 1 }
  0x1d   : > { %s2532_s6 = sld [smem:[#allocation16_spill]] }
  0x1e   : > { %s1859_s26 = sshll.u32 %s2244_s28, 4  ;;  %s2533_s10 = sld [smem:[#allocation17_spill]] }
  0x1f   : > { %s683_s27 = scalar_lea.vmem %s2530_s20, %s1813_s29  ;;  %s724_s18 = scalar_lea.vmem %s2503_s13, %s2244_s28 }
  0x20   : > { %s2258_s25 = scalar_lea.vmem %s2531_s4, %s1859_s26  ;;  %s727_s22 = scalar_lea.vmem %s2504_s14, %s2244_s28 }
  0x21   : > { %s2535_s4 = sld [smem:[#allocation19_spill]] }
  0x22   : > { %s2536_s21 = sld [smem:[#allocation20_spill]] }
  0x23   : > { %s2267_s30 = scalar_lea.vmem %s2532_s6, %s1859_s26  ;;  %s1862_s6 = sshll.u32 %s2244_s28, 5 }
  0x24   : > { %s2284_s3 = scalar_lea.vmem %s2533_s10, %s1859_s26  ;;  %s2298_s1 = scalar_lea.vmem %s2502_s12, %s1862_s6 }
  0x25   : > { %s2537_s17 = sld [smem:[#allocation4_spill]] }
  0x27   : > { %s730_s10 = scalar_lea.vmem %s2535_s4, %s2244_s28 }
  0x28   : > { %s2311_s11 = scalar_lea.vmem %s2536_s21, %s1813_s29 }
  0x2b   : > { %p1823_p7 = scmp.ne.s32.totalorder %s2537_s17, 0 }
  0x2c   : > { %s2538_s21 = sld [smem:[#allocation13_spill]] (!%p1823_p7) }
  0x2d   : > { %739 = sbr.rel (%p1823_p7) target bundleno = 360 (0x168), region = 88  ;;  %s2539_s0 = sld [smem:[#allocation14_spill]] (!%p1823_p7) }
  0x32   : > { %v740_v0 = vld [vmem:[%s683_s27] sm:$0xff]  ;;  %vm743_vm0 = vcmask 261120  }
  0x33   : > { %v744_v1 = vsel %vm743_vm0, %v740_v0, 0.0  ;;  %v1824_v11 = vld [vmem:[%s2538_s21] ss:$0 sm:$0xff] }
  0x34   : > { %745 = vadd.xlane.f32.xlu0 %v744_v1  ;;  %v1825_v13 = vld [vmem:[%s2539_s0] ss:$0 sm:$0xff] }
  0xbd   : > { %v746_v2 = vpop.xlane.xlu0 %745 }
  0xbe   : > { %v748_v3 = vmul.f32 0.03125, %v746_v2 }
  0xc0   : > { %v749_v4 = vsub.f32 %v740_v0, %v748_v3 }
  0xc2   : > { %v750_v5 = vmul.f32 %v749_v4, %v749_v4 }
  0xc4   : > { %v751_v6 = vsel %vm743_vm0, %v750_v5, 0.0 }
  0xc5   : > { %752 = vadd.xlane.f32.xlu0 %v751_v6 }
 0x14e   : > { %v753_v7 = vpop.xlane.xlu0 %752 }
 0x14f   : > { %v754_v8 = vmul.f32 0.03125, %v753_v7 }
 0x151   : > { %v755_v9 = vadd.f32 1e-12, %v754_v8 }
 0x153   : > { %2033 = vrsqrt.f32 %v755_v9 }
 0x160   : > { %v2034_v10 = vpop.eup %2033 }
 0x161   : > { %v757_v12 = vmul.f32 %v2034_v10, %v749_v4 }
 0x163   : > { %v764_v14 = vmul.f32 %v1824_v11, %v757_v12 }
 0x165   : > { %v771_v15 = vadd.f32 %v1825_v13, %v764_v14 }
 0x167   : > { %772 = vst.msk [vmem:[#allocation2] sm:$0xff] %vm743_vm0, %v771_v15 }
 0x168 PF: > { %v2035_v16 = vld [vmem:[%s2258_s25 + $0x8] sm:$0xff]   ;;  %v2107_v17 = vmov 0.0   ;;  %v2036_v18 = vld [vmem:[%s2258_s25] sm:$0xff]   ;;  %vm2108_vm1 = vmmov 0   ;;  %vm798_vm2 = vcmask 261120   ;;  %s2540_s20 = scalar_lea.vmem %s2495_s5, %s2244_s28  ;;  %s2109_s23 = smov 120   ;;  %v898_v39 = vlaneseq }
 0x169   : > { %1893 = vmatprep.subr.bf16.mxu0 %v2107_v17  ;;  %1901 = vmatprep.subr.bf16.mxu1 %v2107_v17  ;;  %v1826_v21 = vld [vmem:[%s2540_s20] ss:$0 sm:$0xff]  ;;  %s2110_s24 = smov 96   ;;  %s2111_s26 = smov 80   ;;  %vm849_vm3 = vcmask 64512   ;;  %vm921_vm4 = vcmask 1043456  }
 0x16a   : > { %1894 = vmatpush3.bf16.msra.mxu0 %v2035_v16  ;;  %1897 = vmatprep.mubr.msk.bf16.mxu0 %vm2108_vm1, %v2107_v17  ;;  %s2112_s2 = smov 88   ;;  %s2113_s15 = smov 72   ;;  %v899_v42 = vshrl.u32 %v898_v39, 7  ;;  %vm1082_vm5 = vcmask 130112   ;;  %vm1200_vm6 = vcmask 195712   ;;  %vm1318_vm7 = vcmask 261312  }
 0x16b   : > { %1895 = vmatprep.subr.bf16.mxu0 %v2107_v17  ;;  %1903 = vmatprep.mubr.msk.bf16.mxu1 %vm2108_vm1, %v2107_v17  ;;  %s2114_s16 = smov 112   ;;  %s2115_s17 = smov 104   ;;  %vm1535_vm8 = vcmask 523264  }
 0x16c   : > { %s2541_s4 = sld [smem:[#allocation10_spill]]  ;;  %v900_v44 = vsub.s32 0, %v899_v42  ;;  %s2116_s0 = smov 56  }
 0x16d   : > { %s2542_s27 = sld [smem:[#allocation12_spill]]  ;;  %s2117_s25 = smov 64  }
 0x16e   : > { %v2329_v19 = vld [vmem:[#allocation2] sm:$0xff]  ;;  %1896 = vmatpush3.bf16.msra.mxu0 %v2036_v18  ;;  %s2118_s19 = smov 40   ;;  %s2119_s20 = smov 48  }
 0x16f   : > { %v779_v20 = vpack.c.bf16 %v2329_v19, %v2329_v19  ;;  %1907 = vmatprep.subr.bf16.mxu0 %v2107_v17 }
 0x171   : > { %1898 = vmatmul.mubr.msk.bf16.vlgmr.msra.gmra.mxu0 %vm798_vm2, %v779_v20 }
 0x172   : > { %1909 = vmatprep.mubr.msk.bf16.mxu0 %vm2108_vm1, %v2107_v17 }
 0x173   : > { %s2543_s29 = scalar_lea.vmem %s2542_s27, %s2541_s4  ;;  %s2545_s4 = scalar_lea.vmem %s2498_s8, %s2244_s28 }
 0x174   : > { %v843_v40 = vld [vmem:[%s2543_s29] sm:$0x1] }
 0x175   : > { %v844_v41 = vsub.f32 1.0, %v843_v40 }
 0x177   : > { %v845_v43 = vmul.f32 -1e+09, %v844_v41 }
 0x179   : > { %v901_v45 = vrot.slane %v845_v43, %v900_v44 }
 0x231   : > { %v836_v22 = vpop.f32.mrf.mxu0 }
 0x232   : > { %v837_v23 = vadd.f32 %v1826_v21, %v836_v22 }
 0x233   : > { %v1899_v24 = vpop.f32.mrf.mxu0 }
 0x234   : > { %v2345_v25 = vpack.c.bf16 %v837_v23, %v837_v23 }
 0x235   : > { %v839_v26 = vpop.f32.mrf.mxu0 }
 0x236   : > { %966 = vrot.lane.b32.xlu1 %v2345_v25, %s2109_s23  ;;  %847 = vrot.lane.b32.xlu0 %v2345_v25, %s2110_s24  ;;  %s2120_s23 = smov 8   ;;  %s2121_s24 = smov 16  }
 0x237   : > { %v1900_v27 = vpop.f32.mrf.mxu0 }
 0x23a   : > { %1086 = vrot.lane.b32.xlu1 %v2345_v25, %s2111_s26  ;;  %968 = vrot.lane.b32.xlu0 %v2345_v25, %s2112_s2  ;;  %s2122_s26 = smov 24  }
 0x23e   : > { %1204 = vrot.lane.b32.xlu1 %v2345_v25, %s2113_s15  ;;  %1084 = vrot.lane.b32.xlu0 %v2345_v25, %s2114_s16  ;;  %s2544_s15 = scalar_lea.vmem %s2497_s7, %s2244_s28 }
 0x242   : > { %1202 = vrot.lane.b32.xlu0 %v2345_v25, %s2115_s17 }
 0x2a8   : > { %v848_v28 = vpop.permute.xlu0 %847  ;;  %v967_v31 = vpop.permute.xlu1 %966 }
 0x2a9   : > { %v854_v29 = vsel %vm849_vm3, %v848_v28, 0 }
 0x2aa   : > { %1902 = vmatpush3.bf16.xpose.msra.mxu1 %v854_v29 }
 0x2ab   : > { %1913 = vmatprep.subr.bf16.mxu1 %v2107_v17 }
 0x2ac   : > { %v969_v30 = vpop.permute.xlu0 %968  ;;  %v1087_v33 = vpop.permute.xlu1 %1086 }
 0x2ad   : > { %v974_v32 = vsel %vm849_vm3, %v969_v30, 0  ;;  %v1092_v34 = vsel %vm849_vm3, %v1087_v33, 0 }
 0x2b0   : > { %v1205_v35 = vpop.permute.xlu1 %1204  ;;  %v1085_v36 = vpop.permute.xlu0 %1084 }
 0x2b1   : > { %1904 = vmatmul.mubr.msk.bf16.vlgmr.msra.gmra.mxu1 %vm849_vm3, %v2345_v25  ;;  %v1210_v37 = vsel %vm849_vm3, %v1205_v35, 0 }
 0x2b2   : > { %1914 = vmatpush3.bf16.xpose.msra.mxu1 %v974_v32  ;;  %1915 = vmatprep.mubr.msk.bf16.mxu1 %vm2108_vm1, %v2107_v17 }
 0x2b3   : > { %1925 = vmatprep.subr.bf16.mxu1 %v2107_v17 }
 0x2b4   : > { %v1203_v38 = vpop.permute.xlu0 %1202 }
 0x2b9   : > { %1916 = vmatmul.mubr.msk.bf16.vlgmr.msra.gmra.mxu1 %vm849_vm3, %v967_v31 }
 0x2ba   : > { %1926 = vmatpush3.bf16.xpose.msra.mxu1 %v1092_v34  ;;  %1927 = vmatprep.mubr.msk.bf16.mxu1 %vm2108_vm1, %v2107_v17 }
 0x2bb   : > { %1937 = vmatprep.subr.bf16.mxu1 %v2107_v17 }
 0x2c1   : > { %1928 = vmatmul.mubr.msk.bf16.vlgmr.msra.gmra.mxu1 %vm849_vm3, %v1085_v36 }
 0x2c2   : > { %1938 = vmatpush3.bf16.xpose.msra.mxu1 %v1210_v37  ;;  %1939 = vmatprep.mubr.msk.bf16.mxu1 %vm2108_vm1, %v2107_v17 }
 0x2c3   : > { %1949 = vmatprep.subr.bf16.mxu1 %v2107_v17 }
 0x2c9   : > { %1940 = vmatmul.mubr.msk.bf16.vlgmr.msra.gmra.mxu1 %vm849_vm3, %v1203_v38 }
 0x2ca   : > { %1953 = vmatprep.mubr.msk.bf16.mxu1 %vm2108_vm1, %v2107_v17 }
 0x371   : > { %v890_v46 = vpop.f32.mrf.mxu1 }
 0x372   : > { %v896_v47 = vmul.f32 0.35355338, %v890_v46 }
 0x373   : > { %v1905_v48 = vpop.f32.mrf.mxu1 }
 0x374   : > { %v903_v49 = vadd.f32 %v901_v45, %v896_v47 }
 0x375   : > { %v893_v50 = vpop.f32.mrf.mxu1 }
 0x376   : > { %v904_v51 = vsel %vm849_vm3, %v903_v49, -inf }
 0x377   : > { %905 = vmax.xlane.f32.xlu1 %v904_v51  ;;  %v1906_v52 = vpop.f32.mrf.mxu1 }
 0x379   : > { %v1010_v53 = vpop.f32.mrf.mxu1 }
 0x37a   : > { %v1016_v54 = vmul.f32 0.35355338, %v1010_v53 }
 0x37b   : > { %v1917_v55 = vpop.f32.mrf.mxu1 }
 0x37c   : > { %v1017_v56 = vadd.f32 %v1016_v54, %v901_v45 }
 0x37d   : > { %v1013_v57 = vpop.f32.mrf.mxu1 }
 0x37e   : > { %v1018_v58 = vsel %vm849_vm3, %v1017_v56, -inf }
 0x37f   : > { %1019 = vmax.xlane.f32.xlu0 %v1018_v58  ;;  %v1918_v59 = vpop.f32.mrf.mxu1 }
 0x381   : > { %v1128_v60 = vpop.f32.mrf.mxu1 }
 0x382   : > { %v1134_v61 = vmul.f32 0.35355338, %v1128_v60 }
 0x383   : > { %v1929_v62 = vpop.f32.mrf.mxu1 }
 0x384   : > { %v1135_v63 = vadd.f32 %v1134_v61, %v901_v45 }
 0x385   : > { %v1131_v0 = vpop.f32.mrf.mxu1 }
 0x386   : > { %v1136_v1 = vsel %vm849_vm3, %v1135_v63, -inf  ;;  %v2037_v0 = vld [vmem:[%s2267_s30 + $0x8] sm:$0xff]  }
 0x387   : > { %1137 = vmax.xlane.f32.xlu0 %v1136_v1  ;;  %v1930_v2 = vpop.f32.mrf.mxu1  ;;  %1950 = vmatpush3.bf16.msra.mxu1 %v2037_v0 }
 0x388   : > { %v2038_v2 = vld [vmem:[%s2267_s30] sm:$0xff]   ;;  %1951 = vmatprep.subr.bf16.mxu1 %v2107_v17  ;;  %s2550_s30 = sld [smem:[#allocation4_spill]] }
 0x389   : > { %v1246_v3 = vpop.f32.mrf.mxu1 }
 0x38a   : > { %v1252_v4 = vmul.f32 0.35355338, %v1246_v3 }
 0x38b   : > { %v1941_v5 = vpop.f32.mrf.mxu1  ;;  %1952 = vmatpush3.bf16.msra.mxu1 %v2038_v2 }
 0x38c   : > { %v1253_v6 = vadd.f32 %v1252_v4, %v901_v45  ;;  %1965 = vmatprep.subr.bf16.mxu1 %v2107_v17 }
 0x38d   : > { %v1249_v7 = vpop.f32.mrf.mxu1 }
 0x38e   : > { %v1254_v8 = vsel %vm849_vm3, %v1253_v6, -inf  ;;  %p1856_p8 = scmp.ne.s32.totalorder %s2550_s30, 1 }
 0x38f   : > { %1255 = vmax.xlane.f32.xlu1 %v1254_v8  ;;  %v1942_v9 = vpop.f32.mrf.mxu1 }
 0x400   : > { %v906_v10 = vpop.xlane.xlu1 %905 }
 0x401   : > { %v907_v11 = vsub.f32 %v903_v49, %v906_v10 }
 0x403   : > { %v908_v12 = vmul.f32 1.442695, %v907_v11 }
 0x405   : > { %2045 = vpow2.f32 %v908_v12 }
 0x408   : > { %v1020_v13 = vpop.xlane.xlu0 %1019 }
 0x409   : > { %v1021_v14 = vsub.f32 %v1017_v56, %v1020_v13 }
 0x40b   : > { %v1022_v15 = vmul.f32 1.442695, %v1021_v14 }
 0x40d   : > { %2047 = vpow2.f32 %v1022_v15  ;;  %v1838_v15 = vld [vmem:[%s2544_s15] ss:$0 sm:$0xff] }
 0x410   : > { %v1138_v16 = vpop.xlane.xlu0 %1137 }
 0x411   : > { %v1139_v18 = vsub.f32 %v1135_v63, %v1138_v16 }
 0x412   : > { %v2046_v20 = vpop.eup %2045 }
 0x413   : > { %v1140_v21 = vmul.f32 1.442695, %v1139_v18  ;;  %v910_v22 = vsel %vm849_vm3, %v2046_v20, 0.0 }
 0x414   : > { %911 = vadd.xlane.f32.xlu0 %v910_v22 }
 0x415   : > { %2049 = vpow2.f32 %v1140_v21 }
 0x418   : > { %v1256_v28 = vpop.xlane.xlu1 %1255 }
 0x419   : > { %v1257_v29 = vsub.f32 %v1253_v6, %v1256_v28 }
 0x41a   : > { %v2048_v23 = vpop.eup %2047 }
 0x41b   : > { %v1024_v24 = vsel %vm849_vm3, %v2048_v23, 0.0  ;;  %v1258_v30 = vmul.f32 1.442695, %v1257_v29 }
 0x41c   : > { %1025 = vadd.xlane.f32.xlu1 %v1024_v24 }
 0x41d   : > { %2051 = vpow2.f32 %v1258_v30 }
 0x422   : > { %v2050_v26 = vpop.eup %2049 }
 0x423   : > { %v1142_v27 = vsel %vm849_vm3, %v2050_v26, 0.0 }
 0x424   : > { %1143 = vadd.xlane.f32.xlu0 %v1142_v27 }
 0x42a   : > { %v2052_v31 = vpop.eup %2051 }
 0x42b   : > { %v1260_v32 = vsel %vm849_vm3, %v2052_v31, 0.0 }
 0x42d   : > { %1030 = vrot.lane.b32.xlu1 %v2345_v25, %s2116_s0  ;;  %s2547_s0 = sld [smem:[#allocation18_spill]] }
 0x43a   : > { %916 = vrot.lane.b32.xlu0 %v2345_v25, %s2117_s25  ;;  %s2548_s25 = scalar_lea.vmem %s2547_s0, %s2244_s28 }
 0x43e   : > { %1266 = vrot.lane.b32.xlu0 %v2345_v25, %s2118_s19 }
 0x451   : > { %1261 = vadd.xlane.f32.xlu1 %v1260_v32  ;;  %v2040_v32 = vld [vmem:[%s2284_s3] sm:$0xff]  }
 0x462   : > { %1148 = vrot.lane.b32.xlu1 %v2345_v25, %s2119_s20 }
 0x49d   : > { %v912_v33 = vpop.xlane.xlu0 %911 }
 0x49e   : > { %2053 = vrcp.f32 %v912_v33 }
 0x4a5   : > { %v1026_v34 = vpop.xlane.xlu1 %1025 }
 0x4a6   : > { %2055 = vrcp.f32 %v1026_v34 }
 0x4a9   : > { %v1031_v40 = vpop.permute.xlu1 %1030 }
 0x4aa   : > { %v1036_v43 = vsel %vm921_vm4, %v1031_v40, 0 }
 0x4ab   : > { %v2054_v35 = vpop.eup %2053 }
 0x4ac   : > { %v914_v37 = vmul.f32 %v2054_v35, %v2046_v20 }
 0x4ad   : > { %v1144_v36 = vpop.xlane.xlu0 %1143 }
 0x4ae   : > { %v915_v41 = vpack.c.bf16 %v914_v37, %v914_v37  ;;  %2057 = vrcp.f32 %v1144_v36  ;;  %v1842_v36 = vld [vmem:[%s2545_s4] ss:$0 sm:$0xff] }
 0x4b1   : > { %v917_v38 = vpop.permute.xlu0 %916 }
 0x4b2   : > { %v923_v39 = vsel %vm921_vm4, %v917_v38, 0 }
 0x4b3   : > { %1908 = vmatpush3.bf16.msra.mxu0 %v923_v39  ;;  %v2056_v42 = vpop.eup %2055 }
 0x4b4   : > { %1919 = vmatprep.subr.bf16.mxu0 %v2107_v17  ;;  %v1028_v25 = vmul.f32 %v2056_v42, %v2048_v23  ;;  %v2041_v42 = vld [vmem:[%s2298_s1 + $0x18] sm:$0xff]  }
 0x4b5   : > { %v1267_v50 = vpop.permute.xlu0 %1266 }
 0x4b6   : > { %1910 = vmatmul.mubr.msk.bf16.vlgmr.msra.gmra.mxu0 %vm849_vm3, %v915_v41  ;;  %v1029_v44 = vpack.c.bf16 %v1028_v25, %v1028_v25  ;;  %v1272_v52 = vsel %vm921_vm4, %v1267_v50, 0  ;;  %v2043_v25 = vld [vmem:[%s2298_s1 + $0x8] sm:$0xff]  }
 0x4b7   : > { %1920 = vmatpush3.bf16.msra.mxu0 %v1036_v43  ;;  %1921 = vmatprep.mubr.msk.bf16.mxu0 %vm2108_vm1, %v2107_v17  ;;  %v2042_v43 = vld [vmem:[%s2298_s1 + $0x10] sm:$0xff]  }
 0x4b8   : > { %1931 = vmatprep.subr.bf16.mxu0 %v2107_v17 }
 0x4bb   : > { %v2058_v45 = vpop.eup %2057 }
 0x4bc   : > { %v1146_v47 = vmul.f32 %v2058_v45, %v2050_v26  ;;  %v1844_v45 = vld [vmem:[%s2548_s25] ss:$0 sm:$0xff] }
 0x4be   : > { %1922 = vmatmul.mubr.msk.bf16.vlgmr.msra.gmra.mxu0 %vm849_vm3, %v1029_v44  ;;  %v1147_v51 = vpack.c.bf16 %v1146_v47, %v1146_v47  ;;  %v2044_v44 = vld [vmem:[%s2298_s1] sm:$0xff]  }
 0x4bf   : > { %1933 = vmatprep.mubr.msk.bf16.mxu0 %vm2108_vm1, %v2107_v17 }
 0x4da   : > { %v1262_v46 = vpop.xlane.xlu1 %1261 }
 0x4db   : > { %2059 = vrcp.f32 %v1262_v46 }
 0x4de   : > { %v1149_v48 = vpop.permute.xlu1 %1148 }
 0x4df   : > { %v1154_v49 = vsel %vm921_vm4, %v1149_v48, 0 }
 0x4e0   : > { %1932 = vmatpush3.bf16.msra.mxu0 %v1154_v49 }
 0x4e1   : > { %1943 = vmatprep.subr.bf16.mxu0 %v2107_v17 }
 0x4e3   : > { %1934 = vmatmul.mubr.msk.bf16.vlgmr.msra.gmra.mxu0 %vm849_vm3, %v1147_v51 }
 0x4e4   : > { %1944 = vmatpush3.bf16.msra.mxu0 %v1272_v52  ;;  %1945 = vmatprep.mubr.msk.bf16.mxu0 %vm2108_vm1, %v2107_v17 }
 0x4e5   : > { %1957 = vmatprep.subr.bf16.mxu0 %v2107_v17 }
 0x4e8   : > { %v2060_v53 = vpop.eup %2059 }
 0x4e9   : > { %v1264_v54 = vmul.f32 %v2060_v53, %v2052_v31  ;;  %v2039_v31 = vld [vmem:[%s2284_s3 + $0x8] sm:$0xff]   ;;  %s2546_s3 = scalar_lea.vmem %s2499_s9, %s2244_s28 }
 0x4ea   : > { %v1843_v38 = vld [vmem:[%s2546_s3] ss:$0 sm:$0xff] }
 0x4eb   : > { %v1265_v55 = vpack.c.bf16 %v1264_v54, %v1264_v54 }
 0x4ed   : > { %1946 = vmatmul.mubr.msk.bf16.vlgmr.msra.gmra.mxu0 %vm849_vm3, %v1265_v55 }
 0x4ee   : > { %1961 = vmatprep.mubr.msk.bf16.mxu0 %vm2108_vm1, %v2107_v17  ;;  %1958 = vmatpush3.bf16.msra.mxu0 %v2039_v31 }
 0x4ef   : > { %1959 = vmatprep.subr.bf16.mxu0 %v2107_v17 }
 0x4f2   : > { %1960 = vmatpush3.bf16.msra.mxu0 %v2040_v32 }
 0x576   : > { %v959_v56 = vpop.f32.mrf.mxu0 }
 0x577   : > { %965 = vst.msk [vmem:[#allocation3] sm:$0xff] %vm849_vm3, %v959_v56 }
 0x578   : > { %v1911_v57 = vpop.f32.mrf.mxu0 }
 0x57a   : > { %v962_v58 = vpop.f32.mrf.mxu0 }
 0x57c   : > { %v1912_v59 = vpop.f32.mrf.mxu0 }
 0x57e   : > { %v1072_v60 = vpop.f32.mrf.mxu0 }
 0x57f   : > { %1079 = vrot.lane.b32.xlu1 %v1072_v60, %s2120_s23  ;;  %v1848_v60 = vld [vmem:[%s724_s18] ss:$0 sm:$0xff] }
 0x580   : > { %v1923_v61 = vpop.f32.mrf.mxu0 }
 0x582   : > { %v1075_v62 = vpop.f32.mrf.mxu0 }
 0x584   : > { %v1924_v63 = vpop.f32.mrf.mxu0 }
 0x5a3   : > { %v1190_v1 = vpop.f32.mrf.mxu0 }
 0x5a4   : > { %1197 = vrot.lane.b32.xlu0 %v1190_v1, %s2121_s24 }
 0x5a5   : > { %v1935_v3 = vpop.f32.mrf.mxu0 }
 0x5a7   : > { %v1193_v4 = vpop.f32.mrf.mxu0 }
 0x5a9   : > { %v1936_v5 = vpop.f32.mrf.mxu0 }
 0x5ad   : > { %v1308_v6 = vpop.f32.mrf.mxu0 }
 0x5ae   : > { %1315 = vrot.lane.b32.xlu1 %v1308_v6, %s2122_s26 }
 0x5af   : > { %v1947_v7 = vpop.f32.mrf.mxu0 }
 0x5b1   : > { %v1311_v8 = vpop.f32.mrf.mxu0 }
 0x5b3   : > { %v1948_v9 = vpop.f32.mrf.mxu0 }
 0x5f1   : > { %v1080_v10 = vpop.permute.xlu1 %1079 }
 0x5f2   : > { %1083 = vst.msk [vmem:[#allocation3] sm:$0xff] %vm1082_vm5, %v1080_v10 }
 0x616   : > { %v1198_v11 = vpop.permute.xlu0 %1197 }
 0x617   : > { %1201 = vst.msk [vmem:[#allocation3] sm:$0xff] %vm1200_vm6, %v1198_v11 }
 0x620   : > { %v1316_v12 = vpop.permute.xlu1 %1315 }
 0x621   : > { %1319 = vst.msk [vmem:[#allocation3] sm:$0xff] %vm1318_vm7, %v1316_v12 }
 0x628   : > { %v1320_v13 = vld [vmem:[#allocation3] sm:$0xff] }
 0x629   : > { %v1326_v14 = vpack.c.bf16 %v1320_v13, %v1320_v13  ;;  %v1854_v13 = vld [vmem:[%s727_s22] ss:$0 sm:$0xff] }
 0x62b   : > { %1954 = vmatmul.mubr.msk.bf16.vlgmr.msra.gmra.mxu1 %vm798_vm2, %v1326_v14 }
 0x62c   : > { %1973 = vmatprep.mubr.msk.bf16.mxu1 %vm2108_vm1, %v2107_v17  ;;  %1966 = vmatpush3.bf16.msra.mxu1 %v2041_v42 }
 0x62d   : > { %1967 = vmatprep.subr.bf16.mxu1 %v2107_v17 }
 0x630   : > { %1968 = vmatpush3.bf16.msra.mxu1 %v2042_v43 }
 0x631   : > { %1969 = vmatprep.subr.bf16.mxu1 %v2107_v17 }
 0x634   : > { %1970 = vmatpush3.bf16.msra.mxu1 %v2043_v25 }
 0x635   : > { %1971 = vmatprep.subr.bf16.mxu1 %v2107_v17 }
 0x638   : > { %1972 = vmatpush3.bf16.msra.mxu1 %v2044_v44 }
 0x6eb   : > { %v1382_v16 = vpop.f32.mrf.mxu1 }
 0x6ec   : > { %v1383_v18 = vadd.f32 %v1838_v15, %v1382_v16  ;;  %v1855_v15 = vld [vmem:[%s730_s10] ss:$0 sm:$0xff] }
 0x6ed   : > { %v1955_v20 = vpop.f32.mrf.mxu1 }
 0x6ee   : > { %v1388_v21 = vadd.f32 %v1383_v18, %v2329_v19 }
 0x6ef   : > { %v1385_v22 = vpop.f32.mrf.mxu1 }
 0x6f0   : > { %v1391_v23 = vsel %vm798_vm2, %v1388_v21, 0.0 }
 0x6f1   : > { %1392 = vadd.xlane.f32.xlu0 %v1391_v23  ;;  %v1956_v24 = vpop.f32.mrf.mxu1 }
 0x77a   : > { %v1393_v26 = vpop.xlane.xlu0 %1392 }
 0x77b   : > { %v1395_v27 = vmul.f32 0.03125, %v1393_v26 }
 0x77d   : > { %v1396_v28 = vsub.f32 %v1388_v21, %v1395_v27 }
 0x77f   : > { %v1397_v29 = vmul.f32 %v1396_v28, %v1396_v28 }
 0x781   : > { %v1398_v30 = vsel %vm798_vm2, %v1397_v29, 0.0 }
 0x782   : > { %1399 = vadd.xlane.f32.xlu1 %v1398_v30 }
 0x80b   : > { %v1400_v19 = vpop.xlane.xlu1 %1399 }
 0x80c   : > { %v1401_v33 = vmul.f32 0.03125, %v1400_v19 }
 0x80e   : > { %v1402_v34 = vadd.f32 1e-12, %v1401_v33 }
 0x810   : > { %2061 = vrsqrt.f32 %v1402_v34 }
 0x81d   : > { %v2062_v35 = vpop.eup %2061 }
 0x81e   : > { %v1404_v37 = vmul.f32 %v2062_v35, %v1396_v28 }
 0x820   : > { %v1411_v39 = vmul.f32 %v1842_v36, %v1404_v37 }
 0x822   : > { %v1418_v40 = vadd.f32 %v1843_v38, %v1411_v39 }
 0x824   : > { %v1424_v41 = vpack.c.bf16 %v1418_v40, %v1418_v40 }
 0x826   : > { %1962 = vmatmul.mubr.msk.bf16.vlgmr.msra.gmra.mxu0 %vm798_vm2, %v1424_v41 }
 0x8e6   : > { %v1480_v46 = vpop.f32.mrf.mxu0 }
 0x8e7   : > { %v1481_v47 = vadd.f32 %v1844_v45, %v1480_v46 }
 0x8e8   : > { %v1963_v48 = vpop.f32.mrf.mxu0 }
 0x8e9   : > { %v1487_v49 = vmul.f32 0.044715, %v1481_v47  ;;  %v1486_v17 = vmul.f32 0.5, %v1481_v47 }
 0x8ea   : > { %v1483_v50 = vpop.f32.mrf.mxu0 }
 0x8eb   : > { %v1488_v51 = vmul.f32 %v1487_v49, %v1481_v47 }
 0x8ec   : > { %v1964_v52 = vpop.f32.mrf.mxu0 }
 0x8ed   : > { %v1489_v53 = vmul.f32 %v1488_v51, %v1481_v47 }
 0x8ef   : > { %v1490_v54 = vadd.f32 %v1489_v53, %v1481_v47 }
 0x8f1   : > { %v1491_v55 = vmul.f32 0.7978846, %v1490_v54 }
 0x8f3   : > { %2063 = vtanh.f32 %v1491_v55 }
 0x900   : > { %v2064_v56 = vpop.eup %2063 }
 0x901   : > { %v1493_v57 = vadd.f32 1.0, %v2064_v56 }
 0x903   : > { %v1494_v58 = vmul.f32 %v1493_v57, %v1486_v17 }
 0x905   : > { %v1504_v59 = vpack.c.bf16 %v1494_v58, %v1494_v58 }
 0x907   : > { %1974 = vmatmul.mubr.msk.bf16.vlgmr.msra.gmra.mxu1 %vm1535_vm8, %v1504_v59 }
 0x9c7   : > { %v1573_v61 = vpop.f32.mrf.mxu1 }
 0x9c8   : > { %v1574_v62 = vadd.f32 %v1848_v60, %v1573_v61 }
 0x9c9   : > { %v1975_v63 = vpop.f32.mrf.mxu1 }
 0x9ca   : > { %v1579_v0 = vadd.f32 %v1574_v62, %v1418_v40 }
 0x9cb   : > { %v1576_v1 = vpop.f32.mrf.mxu1 }
 0x9cc   : > { %v1582_v2 = vsel %vm798_vm2, %v1579_v0, 0.0 }
 0x9cd   : > { %1583 = vadd.xlane.f32.xlu0 %v1582_v2  ;;  %v1976_v3 = vpop.f32.mrf.mxu1 }
 0xa56   : > { %v1584_v4 = vpop.xlane.xlu0 %1583 }
 0xa57   : > { %v1585_v5 = vmul.f32 0.03125, %v1584_v4 }
 0xa59   : > { %v1586_v6 = vsub.f32 %v1579_v0, %v1585_v5 }
 0xa5b   : > { %v1587_v7 = vmul.f32 %v1586_v6, %v1586_v6 }
 0xa5d   : > { %v1588_v8 = vsel %vm798_vm2, %v1587_v7, 0.0 }
 0xa5e   : > { %1589 = vadd.xlane.f32.xlu0 %v1588_v8 }
 0xae7   : > { %v1590_v9 = vpop.xlane.xlu0 %1589 }
 0xae8   : > { %v1591_v10 = vmul.f32 0.03125, %v1590_v9 }
 0xaea   : > { %v1592_v11 = vadd.f32 1e-12, %v1591_v10 }
 0xaec   : > { %2065 = vrsqrt.f32 %v1592_v11 }
 0xaf9   : > { %v2066_v12 = vpop.eup %2065 }
 0xafa   : > { %v1594_v14 = vmul.f32 %v2066_v12, %v1586_v6 }
 0xafc   : > { %v1601_v16 = vmul.f32 %v1854_v13, %v1594_v14  ;;  %1613 = sbr.rel (%p1856_p8) target bundleno = 2818 (0xb02), region = 92 }
 0xafe   : > { %v1608_v18 = vadd.f32 %v1855_v15, %v1601_v16 }
 0xb00   : > { %1609 = vst.msk [vmem:[#allocation2] sm:$0xff] %vm798_vm2, %v1608_v18 }
 0xb01   : > { %1614 = vst.msk [vmem:[%s2311_s11] sm:$0xff] %vm798_vm2, %v1608_v18 }
 0xb02 PF: > { %s2551_s2 = sld [smem:[#allocation7_spill]] }
 0xb03   : > { %s2552_s21 = sld [smem:[#allocation5_spill]] }
 0xb04   : > { %s2553_s22 = sld [smem:[#allocation6_spill]] }
 0xb05   : > { %s2554_s23 = sld [smem:[#allocation8_spill]] }
 0xb06   : > { %s2555_s24 = sld [smem:[#allocation9_spill]] }
 0xb08   : > { %s26_s25 = sadd.s32 1, %s2551_s2  }
 0xb09   : > { %p23_p9 = scmp.ge.s32.totalorder %s26_s25, 6  }
 0xb0b   :  { %25 = sbr.rel (!%p23_p9) target bundleno = 11 (0xb), region = 161 }

</bundles_post_ra>
